<compile_context>
chip_gen: v5e
topology: v5e:2x2
jax: 0.10.0
libtpu: 0.0.40
codegen_flags: <defaults>
</compile_context>

<pallas_src>
import numpy as np
import jax
import jax.numpy as jnp
from jax import lax
from jax.experimental import pallas as pl
from jax.experimental.pallas import tpu as pltpu


# ----------------------------------------------------------------------------
# PyTorch-compatible bilinear antialias interpolation weights
# (aten::upsample_bilinear2d_aa, align_corners=False: triangle filter,
#  support = max(scale, 1), int-truncated window bounds, border renormalized).
# For upsampling (scale < 1) this reduces exactly to plain align_corners=False
# bilinear, so it matches F.interpolate(..., antialias=True) in both regimes.
# ----------------------------------------------------------------------------
def _bilinear_aa_weights(in_size: int, out_size: int) -> np.ndarray:
    scale = in_size / out_size
    support = max(scale, 1.0)
    invscale = 1.0 / max(scale, 1.0)
    W = np.zeros((out_size, in_size), dtype=np.float64)
    for i in range(out_size):
        center = scale * (i + 0.5)
        xmin = max(int(center - support + 0.5), 0)
        xmax = min(int(center + support + 0.5), in_size)
        js = np.arange(xmin, xmax, dtype=np.float64)
        w = 1.0 - np.abs((js + 0.5 - center) * invscale)
        w = np.clip(w, 0.0, None)
        total = w.sum()
        if total > 0.0:
            w = w / total
        W[i, xmin:xmax] = w
    return W.astype(np.float32)


# ----------------------------------------------------------------------------
# Kernel factory: one grid step = one row of crops (all nx columns, all C
# channels), processed one (channel, crop) pair at a time.
#   band_ref : (C, S, W)  [or (C, H, W) in the full-image fallback]
#   w_ref    : (out, S)   bf16 weights shared by the x- and y-pass
#   out_ref  : (nx, C, out, out)
# ----------------------------------------------------------------------------
def _make_row_kernel(nx, s, out_size, c, identity, full_image):
    unroll_c = c <= 8   # small channel counts: unroll for LLO visibility

    def _crop(band_ref, ch, j):
        # Static lane offset j*s (Python int); dynamic offsets only on the
        # sublane axis (full-image fallback), which lowers cheaply.
        if full_image:
            i = pl.program_id(0)
            return band_ref[ch, pl.ds(i * s, s), j * s:(j + 1) * s]
        return band_ref[ch, :, j * s:(j + 1) * s]

    if identity:
        # crop_size == output_size: exact copy, no interpolation / rounding.
        def copy_kernel(band_ref, out_ref):
            def ch_body(ch, carry):
                for j in range(nx):                          # static offsets
                    out_ref[j, ch] = _crop(band_ref, ch, j)
                return carry
            lax.fori_loop(0, c, ch_body, 0, unroll=unroll_c)
        return copy_kernel

    def resize_kernel(band_ref, w_ref, out_ref):
        wmat = w_ref[...]                                    # (out, S) bf16

        def ch_body(ch, carry):
            for j in range(nx):                              # static offsets
                crop = _crop(band_ref, ch, j).astype(jnp.bfloat16)  # (S, S)
                # x-pass: t[sy, ox] = sum_sx crop[sy, sx] * w[ox, sx]
                t = lax.dot_general(
                    crop, wmat, (((1,), (1,)), ((), ())),
                    preferred_element_type=jnp.float32)       # (S, out) f32
                # y-pass: r[oy, ox] = sum_sy w[oy, sy] * t[sy, ox]
                r = lax.dot_general(
                    wmat, t.astype(jnp.bfloat16),
                    (((1,), (0,)), ((), ())),
                    preferred_element_type=jnp.float32)       # (out, out) f32
                out_ref[j, ch] = r.astype(out_ref.dtype)
            return carry
        lax.fori_loop(0, c, ch_body, 0, unroll=unroll_c)
    return resize_kernel


def _vmem_limit_bytes(c, band_rows, band_cols, band_itemsize,
                      nx, s, out_size, out_itemsize):
    """Explicit per-step VMEM footprint, capped with headroom below physical."""
    band = c * band_rows * band_cols * band_itemsize        # one band buffer
    wts = out_size * s * 2                                   # bf16 weights
    outb = nx * c * out_size * out_size * out_itemsize       # one output buffer
    interm = (s * s * 2                                      # bf16 crop
              + s * out_size * (4 + 2)                       # f32 + bf16 x-pass
              + out_size * out_size * (4 + out_itemsize))    # f32 y-pass + cast
    est = int(1.3 * (2 * (band + wts + outb) + interm))      # 2x = double-buffer
    floor = 32 * 1024 * 1024
    try:
        cap = int(getattr(pltpu.get_tpu_info(), "vmem_capacity_bytes",
                          128 * 1024 * 1024))
    except Exception:
        cap = 128 * 1024 * 1024
    ceiling = max(floor, cap - 16 * 1024 * 1024)             # compiler headroom
    return int(min(max(est, floor), ceiling))


# ----------------------------------------------------------------------------
# pallas_call wrapper: grid over crop rows, crop extraction fused via BlockSpec
# ----------------------------------------------------------------------------
def _resize_rows_pallas(img, crop_size, output_size):
    c, h, w = img.shape
    ny, nx = h // crop_size, w // crop_size
    n = ny * nx
    identity = (crop_size == output_size)
    out_dtype = img.dtype

    # Resize path feeds the MXU bf16 operands anyway, so cast the image ONCE
    # here (halves band DMA/VMEM); identity path keeps the exact input dtype.
    if identity:
        band = img
    else:
        band = (img.astype(jnp.bfloat16)
                if (crop_size % 16 == 0 or crop_size == h) else img)

    sub = max(8, 32 // band.dtype.itemsize)       # sublane tile for band dtype
    full_image = not (crop_size % sub == 0 or crop_size == h)
    # TODO(synk): crop sizes not a multiple of the sublane tile fall back to a
    #             whole-image resident block; tile rows manually for huge images.

    if full_image:
        band_spec = pl.BlockSpec((c, h, w), lambda i: (0, 0, 0))
        band_rows, band_cols = h, w
    else:
        band_spec = pl.BlockSpec((c, crop_size, w), lambda i: (0, i, 0))
        band_rows, band_cols = crop_size, w

    out_spec = pl.BlockSpec((nx, c, output_size, output_size),
                            lambda i: (i, 0, 0, 0))
    out_shape = jax.ShapeDtypeStruct((n, c, output_size, output_size), out_dtype)

    kernel = _make_row_kernel(nx, crop_size, output_size, c, identity, full_image)

    compiler_params = pltpu.CompilerParams(
        dimension_semantics=("parallel",),
        vmem_limit_bytes=_vmem_limit_bytes(
            c, band_rows, band_cols, band.dtype.itemsize,
            nx, crop_size, output_size, np.dtype(out_dtype).itemsize))

    if identity:
        return pl.pallas_call(
            kernel,
            out_shape=out_shape,
            grid=(ny,),
            in_specs=[band_spec],
            out_specs=out_spec,
            compiler_params=compiler_params,
        )(band)

    # One shared (out, S) bf16 weight matrix, used by both separable passes
    # (transposed use expressed via dot_general dimension_numbers).
    wmat = jnp.asarray(_bilinear_aa_weights(crop_size, output_size),
                       dtype=jnp.bfloat16)
    w_spec = pl.BlockSpec((output_size, crop_size), lambda i: (0, 0))

    return pl.pallas_call(
        kernel,
        out_shape=out_shape,
        grid=(ny,),
        in_specs=[band_spec, w_spec],
        out_specs=out_spec,
        compiler_params=compiler_params,
    )(band, wmat)


# ----------------------------------------------------------------------------
# Module-equivalent wrapper
# ----------------------------------------------------------------------------
def grid_crop_and_resize(img, crop_size, output_size=518,
                         return_positions=False):
    c, h, w = img.shape
    ny, nx = h // crop_size, w // crop_size

    out = _resize_rows_pallas(img, crop_size, output_size)

    if return_positions:
        x_idx = jnp.arange(nx, dtype=jnp.int32) * crop_size
        y_idx = jnp.arange(ny, dtype=jnp.int32) * crop_size
        y_grid, x_grid = jnp.meshgrid(y_idx, x_idx, indexing="ij")
        positions = jnp.stack([x_grid.reshape(-1), y_grid.reshape(-1)], axis=1)
        return out, positions
    return out


# ----------------------------------------------------------------------------
# Demo / self-check
# ----------------------------------------------------------------------------
if __name__ == "__main__":
    key = jax.random.PRNGKey(0)
    C, H, W = 3, 32, 32
    crop_size, output_size = 16, 64

    img = jax.random.normal(key, (C, H, W), dtype=jnp.float32)

    out, pos = grid_crop_and_resize(img, crop_size, output_size,
                                    return_positions=True)
    out = jax.block_until_ready(out)
    pos = jax.block_until_ready(pos)

    ny, nx = H // crop_size, W // crop_size
    N = ny * nx
    assert out.shape == (N, C, output_size, output_size), out.shape
    assert pos.shape == (N, 2), pos.shape

    # Reference crops (pure layout, used only for the checks below).
    crops_ref = img.reshape(C, ny, crop_size, nx, crop_size)
    crops_ref = jnp.transpose(crops_ref, (1, 3, 0, 2, 4))
    crops_ref = crops_ref.reshape(N, C, crop_size, crop_size)

    hi = jax.lax.Precision.HIGHEST
    wfull = jnp.asarray(_bilinear_aa_weights(crop_size, output_size))

    # Mirror of the kernel's math: bf16 operands, f32 accumulation, x-pass
    # result rounded to bf16 before the y-pass.
    w_bf = wfull.astype(jnp.bfloat16).astype(jnp.float32)
    crops_bf = crops_ref.astype(jnp.bfloat16).astype(jnp.float32)
    t_ref = jnp.einsum("ncyx,px->ncyp", crops_bf, w_bf, precision=hi)
    t_ref = t_ref.astype(jnp.bfloat16).astype(jnp.float32)
    ref = jnp.einsum("oy,ncyp->ncop", w_bf, t_ref, precision=hi)
    assert jnp.allclose(out, ref, atol=2e-2, rtol=2e-2), \
        float(jnp.max(jnp.abs(out - ref)))

    # Also close to the full-f32 separable reference (bf16 rounding only).
    ref_f32 = jnp.einsum("oy,ncyx,px->ncop", wfull, crops_ref, wfull,
                         precision=hi)
    assert jnp.allclose(out, ref_f32, atol=6e-2, rtol=6e-2), \
        float(jnp.max(jnp.abs(out - ref_f32)))

    # Positions must match the module's (x, y) meshgrid convention.
    exp_pos = np.array([[0, 0], [16, 0], [0, 16], [16, 16]], dtype=np.int32)
    assert np.array_equal(np.asarray(pos), exp_pos), pos

    # Identity path (crop_size == output_size): exact copy of the crops.
    out_id = jax.block_until_ready(
        grid_crop_and_resize(img, crop_size, crop_size))
    assert out_id.shape == (N, C, crop_size, crop_size)
    assert jnp.array_equal(out_id, crops_ref)

    print("KERNEL_OK")
</pallas_src>

<mosaic_0001>
module attributes {stable_mosaic.version = 11 : i64} {
  func.func @resize_kernel(%arg0: i32, %arg1: memref<3x16x32xbf16, #tpu.memory_space<vmem>>, %arg2: memref<64x16xbf16, #tpu.memory_space<vmem>>, %arg3: memref<2x3x64x64xf32, #tpu.memory_space<vmem>>) attributes {dimension_semantics = [#tpu.dimension_semantics<parallel>], iteration_bounds = array<i64: 2>, scalar_prefetch = 0 : i64, scratch_operands = 0 : i64, tpu.core_type = #tpu.core_type<tc>, window_params = [{transform_indices = @transform_0, window_bounds = array<i64: 3, 16, 32>}, {pipeline_mode = #tpu.pipeline_mode<synchronous>, transform_indices = @transform_1, window_bounds = array<i64: 64, 16>}, {transform_indices = @transform_2, window_bounds = array<i64: 2, 3, 64, 64>}]} {
    %c0 = arith.constant 0 : index
    %c0_0 = arith.constant 0 : index
    %0 = vector.load %arg2[%c0, %c0_0] : memref<64x16xbf16, #tpu.memory_space<vmem>>, vector<64x16xbf16>
    %c0_i32 = arith.constant 0 : i32
    %1 = arith.index_cast %c0_i32 : i32 to index
    %c0_1 = arith.constant 0 : index
    %c0_2 = arith.constant 0 : index
    %2 = vector.load %arg1[%1, %c0_1, %c0_2] : memref<3x16x32xbf16, #tpu.memory_space<vmem>>, vector<1x16x16xbf16>
    %3 = vector.shape_cast %2 : vector<1x16x16xbf16> to vector<16x16xbf16>
    %cst = arith.constant dense<0.000000e+00> : vector<16x64xf32>
    %4 = tpu.matmul %3, %0, %cst {dimension_numbers = #tpu.dot_dimension_numbers<[1], [1], [0], [0], [0, 0, 1, 0], [], []>} : vector<16x16xbf16>, vector<64x16xbf16>, vector<16x64xf32> -> vector<16x64xf32>
    %5 = arith.truncf %4 : vector<16x64xf32> to vector<16x64xbf16>
    %cst_3 = arith.constant dense<0.000000e+00> : vector<64x64xf32>
    %6 = tpu.matmul %0, %5, %cst_3 {dimension_numbers = #tpu.dot_dimension_numbers<[1], [0], [0], [1], [0, 0, 1, 1], [], []>} : vector<64x16xbf16>, vector<16x64xbf16>, vector<64x64xf32> -> vector<64x64xf32>
    %c0_4 = arith.constant 0 : index
    %7 = arith.index_cast %c0_i32 : i32 to index
    %c0_5 = arith.constant 0 : index
    %c0_6 = arith.constant 0 : index
    %8 = vector.load %arg3[%c0_4, %7, %c0_5, %c0_6] : memref<2x3x64x64xf32, #tpu.memory_space<vmem>>, vector<1x1x64x64xf32>
    %9 = vector.shape_cast %8 : vector<1x1x64x64xf32> to vector<64x64xf32>
    %10 = vector.shape_cast %6 : vector<64x64xf32> to vector<1x1x64x64xf32>
    tpu.vector_store %arg3[%c0_4, %7, %c0_5, %c0_6], %10 {strides = array<i32>} : memref<2x3x64x64xf32, #tpu.memory_space<vmem>>, vector<1x1x64x64xf32>,
    %11 = arith.index_cast %c0_i32 : i32 to index
    %c0_7 = arith.constant 0 : index
    %c16 = arith.constant 16 : index
    %12 = vector.load %arg1[%11, %c0_7, %c16] : memref<3x16x32xbf16, #tpu.memory_space<vmem>>, vector<1x16x16xbf16>
    %13 = vector.shape_cast %12 : vector<1x16x16xbf16> to vector<16x16xbf16>
    %cst_8 = arith.constant dense<0.000000e+00> : vector<16x64xf32>
    %14 = tpu.matmul %13, %0, %cst_8 {dimension_numbers = #tpu.dot_dimension_numbers<[1], [1], [0], [0], [0, 0, 1, 0], [], []>} : vector<16x16xbf16>, vector<64x16xbf16>, vector<16x64xf32> -> vector<16x64xf32>
    %15 = arith.truncf %14 : vector<16x64xf32> to vector<16x64xbf16>
    %cst_9 = arith.constant dense<0.000000e+00> : vector<64x64xf32>
    %16 = tpu.matmul %0, %15, %cst_9 {dimension_numbers = #tpu.dot_dimension_numbers<[1], [0], [0], [1], [0, 0, 1, 1], [], []>} : vector<64x16xbf16>, vector<16x64xbf16>, vector<64x64xf32> -> vector<64x64xf32>
    %c1 = arith.constant 1 : index
    %17 = arith.index_cast %c0_i32 : i32 to index
    %c0_10 = arith.constant 0 : index
    %c0_11 = arith.constant 0 : index
    %18 = vector.load %arg3[%c1, %17, %c0_10, %c0_11] : memref<2x3x64x64xf32, #tpu.memory_space<vmem>>, vector<1x1x64x64xf32>
    %19 = vector.shape_cast %18 : vector<1x1x64x64xf32> to vector<64x64xf32>
    %20 = vector.shape_cast %16 : vector<64x64xf32> to vector<1x1x64x64xf32>
    tpu.vector_store %arg3[%c1, %17, %c0_10, %c0_11], %20 {strides = array<i32>} : memref<2x3x64x64xf32, #tpu.memory_space<vmem>>, vector<1x1x64x64xf32>,
    %c1_i32 = arith.constant 1 : i32
    %21 = arith.index_cast %c1_i32 : i32 to index
    %c0_12 = arith.constant 0 : index
    %c0_13 = arith.constant 0 : index
    %22 = vector.load %arg1[%21, %c0_12, %c0_13] : memref<3x16x32xbf16, #tpu.memory_space<vmem>>, vector<1x16x16xbf16>
    %23 = vector.shape_cast %22 : vector<1x16x16xbf16> to vector<16x16xbf16>
    %cst_14 = arith.constant dense<0.000000e+00> : vector<16x64xf32>
    %24 = tpu.matmul %23, %0, %cst_14 {dimension_numbers = #tpu.dot_dimension_numbers<[1], [1], [0], [0], [0, 0, 1, 0], [], []>} : vector<16x16xbf16>, vector<64x16xbf16>, vector<16x64xf32> -> vector<16x64xf32>
    %25 = arith.truncf %24 : vector<16x64xf32> to vector<16x64xbf16>
    %cst_15 = arith.constant dense<0.000000e+00> : vector<64x64xf32>
    %26 = tpu.matmul %0, %25, %cst_15 {dimension_numbers = #tpu.dot_dimension_numbers<[1], [0], [0], [1], [0, 0, 1, 1], [], []>} : vector<64x16xbf16>, vector<16x64xbf16>, vector<64x64xf32> -> vector<64x64xf32>
    %c0_16 = arith.constant 0 : index
    %27 = arith.index_cast %c1_i32 : i32 to index
    %c0_17 = arith.constant 0 : index
    %c0_18 = arith.constant 0 : index
    %28 = vector.load %arg3[%c0_16, %27, %c0_17, %c0_18] : memref<2x3x64x64xf32, #tpu.memory_space<vmem>>, vector<1x1x64x64xf32>
    %29 = vector.shape_cast %28 : vector<1x1x64x64xf32> to vector<64x64xf32>
    %30 = vector.shape_cast %26 : vector<64x64xf32> to vector<1x1x64x64xf32>
    tpu.vector_store %arg3[%c0_16, %27, %c0_17, %c0_18], %30 {strides = array<i32>} : memref<2x3x64x64xf32, #tpu.memory_space<vmem>>, vector<1x1x64x64xf32>,
    %31 = arith.index_cast %c1_i32 : i32 to index
    %c0_19 = arith.constant 0 : index
    %c16_20 = arith.constant 16 : index
    %32 = vector.load %arg1[%31, %c0_19, %c16_20] : memref<3x16x32xbf16, #tpu.memory_space<vmem>>, vector<1x16x16xbf16>
    %33 = vector.shape_cast %32 : vector<1x16x16xbf16> to vector<16x16xbf16>
    %cst_21 = arith.constant dense<0.000000e+00> : vector<16x64xf32>
    %34 = tpu.matmul %33, %0, %cst_21 {dimension_numbers = #tpu.dot_dimension_numbers<[1], [1], [0], [0], [0, 0, 1, 0], [], []>} : vector<16x16xbf16>, vector<64x16xbf16>, vector<16x64xf32> -> vector<16x64xf32>
    %35 = arith.truncf %34 : vector<16x64xf32> to vector<16x64xbf16>
    %cst_22 = arith.constant dense<0.000000e+00> : vector<64x64xf32>
    %36 = tpu.matmul %0, %35, %cst_22 {dimension_numbers = #tpu.dot_dimension_numbers<[1], [0], [0], [1], [0, 0, 1, 1], [], []>} : vector<64x16xbf16>, vector<16x64xbf16>, vector<64x64xf32> -> vector<64x64xf32>
    %c1_23 = arith.constant 1 : index
    %37 = arith.index_cast %c1_i32 : i32 to index
    %c0_24 = arith.constant 0 : index
    %c0_25 = arith.constant 0 : index
    %38 = vector.load %arg3[%c1_23, %37, %c0_24, %c0_25] : memref<2x3x64x64xf32, #tpu.memory_space<vmem>>, vector<1x1x64x64xf32>
    %39 = vector.shape_cast %38 : vector<1x1x64x64xf32> to vector<64x64xf32>
    %40 = vector.shape_cast %36 : vector<64x64xf32> to vector<1x1x64x64xf32>
    tpu.vector_store %arg3[%c1_23, %37, %c0_24, %c0_25], %40 {strides = array<i32>} : memref<2x3x64x64xf32, #tpu.memory_space<vmem>>, vector<1x1x64x64xf32>,
    %c2_i32 = arith.constant 2 : i32
    %41 = arith.index_cast %c2_i32 : i32 to index
    %c0_26 = arith.constant 0 : index
    %c0_27 = arith.constant 0 : index
    %42 = vector.load %arg1[%41, %c0_26, %c0_27] : memref<3x16x32xbf16, #tpu.memory_space<vmem>>, vector<1x16x16xbf16>
    %43 = vector.shape_cast %42 : vector<1x16x16xbf16> to vector<16x16xbf16>
    %cst_28 = arith.constant dense<0.000000e+00> : vector<16x64xf32>
    %44 = tpu.matmul %43, %0, %cst_28 {dimension_numbers = #tpu.dot_dimension_numbers<[1], [1], [0], [0], [0, 0, 1, 0], [], []>} : vector<16x16xbf16>, vector<64x16xbf16>, vector<16x64xf32> -> vector<16x64xf32>
    %45 = arith.truncf %44 : vector<16x64xf32> to vector<16x64xbf16>
    %cst_29 = arith.constant dense<0.000000e+00> : vector<64x64xf32>
    %46 = tpu.matmul %0, %45, %cst_29 {dimension_numbers = #tpu.dot_dimension_numbers<[1], [0], [0], [1], [0, 0, 1, 1], [], []>} : vector<64x16xbf16>, vector<16x64xbf16>, vector<64x64xf32> -> vector<64x64xf32>
    %c0_30 = arith.constant 0 : index
    %47 = arith.index_cast %c2_i32 : i32 to index
    %c0_31 = arith.constant 0 : index
    %c0_32 = arith.constant 0 : index
    %48 = vector.load %arg3[%c0_30, %47, %c0_31, %c0_32] : memref<2x3x64x64xf32, #tpu.memory_space<vmem>>, vector<1x1x64x64xf32>
    %49 = vector.shape_cast %48 : vector<1x1x64x64xf32> to vector<64x64xf32>
    %50 = vector.shape_cast %46 : vector<64x64xf32> to vector<1x1x64x64xf32>
    tpu.vector_store %arg3[%c0_30, %47, %c0_31, %c0_32], %50 {strides = array<i32>} : memref<2x3x64x64xf32, #tpu.memory_space<vmem>>, vector<1x1x64x64xf32>,
    %51 = arith.index_cast %c2_i32 : i32 to index
    %c0_33 = arith.constant 0 : index
    %c16_34 = arith.constant 16 : index
    %52 = vector.load %arg1[%51, %c0_33, %c16_34] : memref<3x16x32xbf16, #tpu.memory_space<vmem>>, vector<1x16x16xbf16>
    %53 = vector.shape_cast %52 : vector<1x16x16xbf16> to vector<16x16xbf16>
    %cst_35 = arith.constant dense<0.000000e+00> : vector<16x64xf32>
    %54 = tpu.matmul %53, %0, %cst_35 {dimension_numbers = #tpu.dot_dimension_numbers<[1], [1], [0], [0], [0, 0, 1, 0], [], []>} : vector<16x16xbf16>, vector<64x16xbf16>, vector<16x64xf32> -> vector<16x64xf32>
    %55 = arith.truncf %54 : vector<16x64xf32> to vector<16x64xbf16>
    %cst_36 = arith.constant dense<0.000000e+00> : vector<64x64xf32>
    %56 = tpu.matmul %0, %55, %cst_36 {dimension_numbers = #tpu.dot_dimension_numbers<[1], [0], [0], [1], [0, 0, 1, 1], [], []>} : vector<64x16xbf16>, vector<16x64xbf16>, vector<64x64xf32> -> vector<64x64xf32>
    %c1_37 = arith.constant 1 : index
    %57 = arith.index_cast %c2_i32 : i32 to index
    %c0_38 = arith.constant 0 : index
    %c0_39 = arith.constant 0 : index
    %58 = vector.load %arg3[%c1_37, %57, %c0_38, %c0_39] : memref<2x3x64x64xf32, #tpu.memory_space<vmem>>, vector<1x1x64x64xf32>
    %59 = vector.shape_cast %58 : vector<1x1x64x64xf32> to vector<64x64xf32>
    %60 = vector.shape_cast %56 : vector<64x64xf32> to vector<1x1x64x64xf32>
    tpu.vector_store %arg3[%c1_37, %57, %c0_38, %c0_39], %60 {strides = array<i32>} : memref<2x3x64x64xf32, #tpu.memory_space<vmem>>, vector<1x1x64x64xf32>,
    %c3_i32 = arith.constant 3 : i32
    return
  }
  func.func @transform_0(%arg0: i32) -> (i32, i32, i32) {
    %c0_i32 = arith.constant 0 : i32
    %c0_i32_0 = arith.constant 0 : i32
    %c0_i32_1 = arith.constant 0 : i32
    return %c0_i32, %arg0, %c0_i32_0 : i32, i32, i32
  }
  func.func @transform_1(%arg0: i32) -> (i32, i32) {
    %c0_i32 = arith.constant 0 : i32
    %c0_i32_0 = arith.constant 0 : i32
    %c0_i32_1 = arith.constant 0 : i32
    return %c0_i32, %c0_i32_0 : i32, i32
  }
  func.func @transform_2(%arg0: i32) -> (i32, i32, i32, i32) {
    %c0_i32 = arith.constant 0 : i32
    %c0_i32_0 = arith.constant 0 : i32
    %c0_i32_1 = arith.constant 0 : i32
    %c0_i32_2 = arith.constant 0 : i32
    return %arg0, %c0_i32, %c0_i32_0, %c0_i32_1 : i32, i32, i32, i32
  }
}

</mosaic_0001>

<bundles_post_ra>
// kernel: tpu_custom_call.1
= control target key start
LH: loop header
LB: loop body
LE: loop exit
PB: predicated region body
PF: predicated region fallthrough
CT: control target
= control target key end

     0   :  { %7 = vsyncpa [#allocation3], 0  ;;  %s1353_s0 = inlined_call_operand.hbm [shape: bf16[3,32,32], index: 0, kind: input, shape index: {}]   ;;  %s1354_s1 = inlined_call_operand.vmem [shape: bf16[64,16], index: 1, kind: input, shape index: {}]   ;;  %s1355_s2 = inlined_call_operand.hbm [shape: f32[4,3,64,64], index: 2, kind: output, shape index: {}]  }
   0x1   :  { %9 = vsyncpa [#allocation3 + $0x1], 0 }
   0x2   :  { %10 = vsyncpa [#allocation4], 0 }
   0x3   :  { %12 = vsyncpa [#allocation4 + $0x1], 0  ;;  %s1004_s9 = smov 0   ;;  %s1006_s10 = smov 0  }
   0x4   :  { %s1008_s11 = smov 0   ;;  %s1010_s12 = smov 0  }
   0x5 LB: > { %s1025_s13 = sadd.s32 4294967295, %s978_s12   ;;  %s709_s14 = sadd.s32 4294967294, %s978_s12   ;;  %s978_s12 = sphi %s1010_s12, %s1363_s12   ;;  %s974_s11 = sphi %s1008_s11, %s1362_s11   ;;  %s970_s10 = sphi %s1006_s10, %s1361_s10   ;;  %s966_s9 = sphi %s1004_s9, %s1360_s9  }
   0x6   : > { %s1029_s15 = sadd.s32 1, %s978_s12   ;;  %s25_s16 = sadd.s32 1, %s974_s11 }
   0x7   : > { %s22_s17 = ssub.s32 %s978_s12, %s1029_s15  ;;  %p32_p0 = scmp.ne.s32.totalorder %s974_s11, %s970_s10 }
   0x8   : > { %p23_p1 = scmp.eq.s32.totalorder %s22_s17, 0  ;;  %p33_p2 = scmp.eq.s32.totalorder %s978_s12, 0 }
   0x9   : > { %p38_p3 = scmp.ne.s32.totalorder %s970_s10, %s966_s9  ;;  %p39_p4 = scmp.eq.s32.totalorder %s1025_s13, 0 }
   0xa   : > { %s1041_s18 = scalar_select %p23_p1, %s974_s11, %s25_s16  }
   0xb   : > { %p1043_p5 = por %p33_p2, %p32_p0  ;;  %p1047_p6 = por %p39_p4, %p38_p3 }
   0xc   : > { %p83_p7 = scmp.eq.s32.totalorder %s1025_s13, 1  ;;  %p89_p8 = scmp.eq.s32.totalorder %s709_s14, 1 }
   0xd   : > { %p711_p11 = scmp.ge.s32.totalorder %s978_s12, 2 }
   0xe   : > { %p1052_p9 = por %p83_p7, %p32_p0  ;;  %p1056_p10 = por %p89_p8, %p38_p3 }
   0xf   : > { %108 = sbr.rel (%p711_p11) target bundleno = 34 (0x22), region = 20 }
  0x14   : > { %s112_s23 = sand.u32 1, %s974_s11   ;;  %s840_s24 = sshll.u32 %s978_s12, 3 }
  0x15   : > { %s851_s25 = smul.u32 24, %s112_s23  ;;  %s121_s28 = scalar_lea.hbm %s1353_s0, %s840_s24 }
  0x16   : > { %s134_s29 = sshll.u32 %s121_s28, 4  ;;  %s980_s6 = smov 256   ;;  %s135_s29 = int_to_ptr.hbm [resolvable:$true] %s134_s29 }
  0x17   : > { %s855_s30 = scalar_select %p1043_p5, [#allocation0], [#allocation8] }
  0x18   : > { %s116_s3 = scalar_lea.vmem [#allocation2], %s851_s25  ;;  %856 = sst [smem:[#allocation7]] (%p1043_p5), %s980_s6 }
  0x19   : > { %s136_s4 = sshll.u32 %s116_s3, 4  ;;  %s126_s5 = sld [smem:[%s855_s30]]   ;;  %s137_s4 = int_to_ptr.vmem [resolvable:$true] %s136_s4 }
  0x1a   : > { %s981_s7 = smov 128   ;;  %s982_s8 = smov 2  }
  0x1b   : > { %857 = sst [smem:[#allocation7 + $0x1]] (%p1043_p5), %s981_s7  ;;  %s983_s14 = smov 64  }
  0x1c   : > { %858 = sst [smem:[#allocation7 + $0x2]] (%p1043_p5), %s982_s8  ;;  %s984_s17 = smov 4  }
  0x1d   : > { %859 = sst [smem:[#allocation7 + $0x3]] (%p1043_p5), %s983_s14  ;;  %s113_s25 = scalar_lea.sflag [#allocation3], %s112_s23 }
  0x1e   : > { %860 = sst [smem:[#allocation7 + $0x4]] (%p1043_p5), %s983_s14  ;;  %s985_s26 = smov [#allocation6]  }
  0x1f   : > { %s714_s16 = sshll.u32 %s126_s5, 26  ;;  %861 = sst [smem:[#allocation7 + $0x5]] (%p1043_p5), %s984_s17 }
  0x20   : > { %s715_s24 = sadd.s32 134217728, %s714_s16 }
  0x21   : > { %862 = dma.general (%p1043_p5), %s135_s29, 384, %s137_s4, %s113_s25, %s985_s26, [#allocation7], %s715_s24, 0  }
  0x22 PF: > { %p716_p12 = scmp.ge.s32.totalorder %s978_s12, 1  ;;  %p157_p13 = scmp.lt.s32.totalorder %s978_s12, 3 }
  0x24   : > { %p158_p0 = pnand %p716_p12, %p157_p13 }
  0x25   : > { %s1087_s27 = sand.u32 (!%p158_p0), 1, %s970_s10  }
  0x26   : > { %161 = sbr.rel (%p158_p0) target bundleno = 820 (0x334), region = 28  ;;  %s164_s30 = scalar_lea.sflag (!%p158_p0), [#allocation3], %s1087_s27 }
  0x27   : > { %s852_s28 = smul.u32 (!%p158_p0), 24, %s1087_s27 }
  0x29   : > { %s1091_s3 = scalar_lea.vmem (!%p158_p0), [#allocation2], %s852_s28 }
  0x2b   : > { %957 = dma.done.wait (%p1047_p6), %s164_s30, 384  }
  0x2c   : > { %959 = vsyncadd (%p1047_p6), %s164_s30, 4294966912  ;;  %vm227_vm0 = vcmask 130048   ;;  %v1100_v0 = vld [vmem:[%s1354_s1 + $0x18] sm:$0xff]  ;;  %v1112_v3 = vld [vmem:[%s1354_s1 + $0x10] sm:$0xff]  ;;  %s986_s4 = smov 112   ;;  %s853_s14 = smul.u32 384, %s1087_s27 }
  0x2d   : > { %v1104_v1 = vsel %vm227_vm0, %v1100_v0, 0  ;;  %v846_v2 = vld [vmem:[%s1091_s3] sm:$0xff]  ;;  %v1117_v4 = vsel %vm227_vm0, %v1112_v3, 0  ;;  %v848_v5 = vld [vmem:[%s1091_s3 + $0x8] sm:$0xff]  ;;  %v850_v19 = vld [vmem:[%s1091_s3 + $0x10] sm:$0xff]  ;;  %vm287_vm1 = vcmask 523264  }
  0x2e   : > { %247 = vmatpush.bf16.xpose.msra.mxu2 %v1104_v1  ;;  %376 = vmatpush.bf16.xpose.msra.mxu0 %v1104_v1  ;;  %v1125_v6 = vld [vmem:[%s1354_s1 + $0x8] sm:$0xff]  ;;  %v1137_v8 = vld [vmem:[%s1354_s1] sm:$0xff]  ;;  %s1176_s16 = scalar_lea.vmem [#allocation5], %s853_s14  ;;  %s854_s17 = smul.u32 384, %s1025_s13 }
  0x2f   : > { %303 = vrot.lane.b32.xlu0 %v846_v2, %s986_s4  ;;  %v1130_v7 = vsel %vm227_vm0, %v1125_v6, 0  ;;  %v1141_v9 = vsel %vm227_vm0, %v1137_v8, 0  ;;  %v845_v10 = vld [vmem:[%s1091_s3] sm:$0xff]  ;;  %561 = vrot.lane.b32.xlu1 %v850_v19, %s986_s4  ;;  %v847_v31 = vld [vmem:[%s1091_s3 + $0x8] sm:$0xff]  ;;  %s633_s28 = sshll.u32 %s1176_s16, 4  ;;  %s932_s20 = scalar_lea.hbm %s1355_s2, 768  ;;  %s634_s28 = int_to_ptr.vmem [resolvable:$true] %s633_s28 }
  0x30   : > { %v849_v33 = vld [vmem:[%s1091_s3 + $0x10] sm:$0xff]  ;;  %s632_s26 = scalar_lea.hbm %s1355_s2, %s854_s17  ;;  %s620_s3 = scalar_lea.sflag [#allocation4], %s1087_s27 }
  0x31   : > { %s635_s30 = sshll.u32 %s632_s26, 4  ;;  %s636_s30 = int_to_ptr.hbm [resolvable:$true] %s635_s30 }
  0x32   : > { %s926_s19 = sshra.s32 %s636_s30, 4  ;;  %s927_s19 = int_to_ptr.hbm [resolvable:$true] %s926_s19 }
  0x33   : > { %s928_s23 = scalar_lea.hbm %s927_s19, 384  ;;  %p933_p4 = scmp.lt.s32.totalorder %s927_s19, %s1355_s2 }
  0x34   : > { %p929_p1 = scmp.ne.s32.totalorder %s927_s19, %s928_s23  ;;  %p934_p5 = scmp.lt.s32.totalorder %s932_s20, %s928_s23 }
  0x36   : > { %248 = vmatpush.bf16.xpose.msra.mxu2 %v1117_v4  ;;  %377 = vmatpush.bf16.xpose.msra.mxu0 %v1117_v4  ;;  %p930_p2 = pnand %p929_p1, %p1052_p9  ;;  %p935_p6 = por %p934_p5, %p933_p4 }
  0x37   : > { %432 = vrot.lane.b32.xlu0 %v848_v5, %s986_s4 }
  0x38   : > { %p931_p3 = pneg %p930_p2 }
  0x3a   : > { %p936_p7 = pnand %p935_p6, %p931_p3 }
  0x3e   : > { %249 = vmatpush.bf16.xpose.msra.mxu2 %v1130_v7  ;;  %378 = vmatpush.bf16.xpose.msra.mxu0 %v1130_v7 }
  0x46   : > { %250 = vmatpush.bf16.xpose.msra.mxu2 %v1141_v9  ;;  %379 = vmatpush.bf16.xpose.msra.mxu0 %v1141_v9 }
  0x4d   : > { %737 = vmatmul.msk.bf16.vlgmr.msra.gmra.mxu2 %vm227_vm0, %v845_v10  ;;  %765 = vmatmul.msk.bf16.vlgmr.msra.gmra.mxu0 %vm227_vm0, %v847_v31 }
  0x4e   : > { %312 = vmatpush.bf16.xpose.msrb.mxu2 %v1104_v1  ;;  %505 = vmatpush.bf16.xpose.msrb.mxu0 %v1104_v1 }
  0x56   : > { %313 = vmatpush.bf16.xpose.msrb.mxu2 %v1117_v4  ;;  %506 = vmatpush.bf16.xpose.msrb.mxu0 %v1117_v4 }
  0x5e   : > { %314 = vmatpush.bf16.xpose.msrb.mxu2 %v1130_v7  ;;  %507 = vmatpush.bf16.xpose.msrb.mxu0 %v1130_v7 }
  0x66   : > { %315 = vmatpush.bf16.xpose.msrb.mxu2 %v1141_v9  ;;  %508 = vmatpush.bf16.xpose.msrb.mxu0 %v1141_v9 }
  0x6d   : > { %803 = vmatmul.msk.bf16.vlgmr.msrb.gmra.mxu0 %vm227_vm0, %v849_v33 }
  0xa1   : > { %v304_v11 = vpop.permute.xlu0 %303  ;;  %v562_v38 = vpop.permute.xlu1 %561 }
  0xa2   : > { %746 = vmatmul.msk.bf16.vlgmr.msrb.gmra.mxu2 %vm227_vm0, %v304_v11 }
  0xa9   : > { %v433_v15 = vpop.permute.xlu0 %432 }
  0xca   : > { %v381_v44 = vpop.f32.mrf.mxu0 }
  0xd0   : > { %v252_v12 = vpop.f32.mrf.mxu2 }
  0xd2   : > { %v383_v46 = vpop.f32.mrf.mxu0 }
  0xd3   : > { %v386_v47 = vpack.c.bf16 %v383_v46, %v381_v44 }
  0xd5   : > { %394 = vmatpush.bf16.msra.mxu2 %v386_v47 }
  0xd8   : > { %v254_v13 = vpop.f32.mrf.mxu2  ;;  %766 = vmatmul.msk.bf16.vlgmr.msra.gmra.mxu2 %vm227_vm0, %v1137_v8 }
  0xd9   : > { %v257_v14 = vpack.c.bf16 %v254_v13, %v252_v12 }
  0xdb   : > { %265 = vmatpush.bf16.msra.mxu1 %v257_v14 }
  0xde   : > { %738 = vmatmul.msk.bf16.vlgmr.msra.gmra.mxu1 %vm227_vm0, %v1137_v8 }
  0xdf   : > { %441 = vmatpush.bf16.xpose.msrb.mxu1 %v1104_v1 }
  0xe7   : > { %442 = vmatpush.bf16.xpose.msrb.mxu1 %v1117_v4 }
  0xe8   : > { %767 = vmatmul.msk.bf16.gmra.mxu2 %vm227_vm0, %v1125_v6 }
  0xea   : > { %v510_v49 = vpop.f32.mrf.mxu0 }
  0xee   : > { %739 = vmatmul.msk.bf16.gmra.mxu1 %vm227_vm0, %v1125_v6 }
  0xef   : > { %443 = vmatpush.bf16.xpose.msrb.mxu1 %v1130_v7 }
  0xf2   : > { %v512_v51 = vpop.f32.mrf.mxu0 }
  0xf3   : > { %v515_v52 = vpack.c.bf16 %v512_v51, %v510_v49 }
  0xf7   : > { %444 = vmatpush.bf16.xpose.msrb.mxu1 %v1141_v9 }
  0xf8   : > { %768 = vmatmul.msk.bf16.gmra.mxu2 %vm227_vm0, %v1112_v3 }
  0xfe   : > { %740 = vmatmul.msk.bf16.gmra.mxu1 %vm227_vm0, %v1112_v3 }
  0xff   : > { %523 = vmatpush.bf16.msra.mxu1 %v515_v52 }
 0x108   : > { %769 = vmatmul.msk.bf16.gmra.mxu2 %vm227_vm0, %v1100_v0 }
 0x10e   : > { %741 = vmatmul.msk.bf16.gmra.mxu1 %vm227_vm0, %v1100_v0 }
 0x11e   : > { %784 = vmatmul.msk.bf16.vlgmr.msrb.gmra.mxu1 %vm227_vm0, %v433_v15 }
 0x125   : > { %v317_v16 = vpop.f32.mrf.mxu2 }
 0x12d   : > { %v319_v17 = vpop.f32.mrf.mxu2 }
 0x12e   : > { %v322_v18 = vpack.c.bf16 %v319_v17, %v317_v16  ;;  %804 = vmatmul.msk.bf16.vlgmr.msra.gmra.mxu1 %vm227_vm0, %v1137_v8 }
 0x130   : > { %330 = vmatpush.bf16.msra.mxu3 %v322_v18 }
 0x133   : > { %747 = vmatmul.msk.bf16.vlgmr.msra.gmra.mxu3 %vm227_vm0, %v1137_v8 }
 0x13e   : > { %805 = vmatmul.msk.bf16.gmra.mxu1 %vm227_vm0, %v1125_v6 }
 0x143   : > { %748 = vmatmul.msk.bf16.gmra.mxu3 %vm227_vm0, %v1125_v6 }
 0x14e   : > { %806 = vmatmul.msk.bf16.gmra.mxu1 %vm227_vm0, %v1112_v3 }
 0x153   : > { %749 = vmatmul.msk.bf16.gmra.mxu3 %vm227_vm0, %v1112_v3 }
 0x15b   : > { %v267_v20 = vpop.f32.mrf.mxu1  ;;  %v396_v59 = vpop.f32.mrf.mxu2 }
 0x15c   : > { %288 = vst.msk [vmem:[%s1176_s16] sm:$0xff] %vm287_vm1, %v267_v20 }
 0x15d   : > { %770 = vst.msk [vmem:[%s1176_s16 + $0x40] sm:$0xff] %vm287_vm1, %v396_v59 }
 0x15e   : > { %807 = vmatmul.msk.bf16.gmra.mxu1 %vm227_vm0, %v1100_v0 }
 0x163   : > { %v269_v21 = vpop.f32.mrf.mxu1  ;;  %750 = vmatmul.msk.bf16.gmra.mxu3 %vm227_vm0, %v1100_v0  ;;  %v398_v61 = vpop.f32.mrf.mxu2 }
 0x164   : > { %289 = vst.msk [vmem:[%s1176_s16 + $0x8] sm:$0xff] %vm287_vm1, %v269_v21 }
 0x165   : > { %771 = vst.msk [vmem:[%s1176_s16 + $0x48] sm:$0xff] %vm287_vm1, %v398_v61 }
 0x16b   : > { %v272_v22 = vpop.f32.mrf.mxu1  ;;  %v401_v63 = vpop.f32.mrf.mxu2 }
 0x16c   : > { %290 = vst.msk [vmem:[%s1176_s16 + $0x10] sm:$0xff] %vm287_vm1, %v272_v22 }
 0x16d   : > { %772 = vst.msk [vmem:[%s1176_s16 + $0x50] sm:$0xff] %vm287_vm1, %v401_v63 }
 0x173   : > { %v274_v23 = vpop.f32.mrf.mxu1 }
 0x174   : > { %291 = vst.msk [vmem:[%s1176_s16 + $0x18] sm:$0xff] %vm287_vm1, %v274_v23 }
 0x17b   : > { %v277_v24 = vpop.f32.mrf.mxu1 }
 0x17c   : > { %292 = vst.msk [vmem:[%s1176_s16 + $0x20] sm:$0xff] %vm287_vm1, %v277_v24 }
 0x183   : > { %v279_v25 = vpop.f32.mrf.mxu1 }
 0x184   : > { %293 = vst.msk [vmem:[%s1176_s16 + $0x28] sm:$0xff] %vm287_vm1, %v279_v25 }
 0x18b   : > { %v282_v26 = vpop.f32.mrf.mxu1 }
 0x18c   : > { %294 = vst.msk [vmem:[%s1176_s16 + $0x30] sm:$0xff] %vm287_vm1, %v282_v26 }
 0x193   : > { %v284_v27 = vpop.f32.mrf.mxu1 }
 0x194   : > { %295 = vst.msk [vmem:[%s1176_s16 + $0x38] sm:$0xff] %vm287_vm1, %v284_v27 }
 0x19b   : > { %v446_v28 = vpop.f32.mrf.mxu1 }
 0x1a3   : > { %v448_v29 = vpop.f32.mrf.mxu1 }
 0x1a4   : > { %v451_v30 = vpack.c.bf16 %v448_v29, %v446_v28 }
 0x1a6   : > { %459 = vmatpush.bf16.msrb.mxu3 %v451_v30 }
 0x1a9   : > { %785 = vmatmul.msk.bf16.vlgmr.msrb.gmra.mxu3 %vm227_vm0, %v1137_v8 }
 0x1aa   : > { %570 = vmatpush.bf16.xpose.msra.mxu3 %v1104_v1 }
 0x1ab   : > { %v525_v60 = vpop.f32.mrf.mxu1 }
 0x1ac   : > { %808 = vst.msk [vmem:[%s1176_s16 + $0x80] sm:$0xff] %vm287_vm1, %v525_v60 }
 0x1b2   : > { %571 = vmatpush.bf16.xpose.msra.mxu3 %v1117_v4 }
 0x1b3   : > { %v527_v62 = vpop.f32.mrf.mxu1 }
 0x1b4   : > { %809 = vst.msk [vmem:[%s1176_s16 + $0x88] sm:$0xff] %vm287_vm1, %v527_v62 }
 0x1b6   : > { %v332_v32 = vpop.f32.mrf.mxu3 }
 0x1b7   : > { %751 = vst.msk [vmem:[%s1176_s16 + $0xc0] sm:$0xff] %vm287_vm1, %v332_v32 }
 0x1b9   : > { %786 = vmatmul.msk.bf16.gmra.mxu3 %vm227_vm0, %v1125_v6 }
 0x1ba   : > { %572 = vmatpush.bf16.xpose.msra.mxu3 %v1130_v7 }
 0x1bb   : > { %v530_v1 = vpop.f32.mrf.mxu1 }
 0x1bc   : > { %810 = vst.msk [vmem:[%s1176_s16 + $0x90] sm:$0xff] %vm287_vm1, %v530_v1 }
 0x1be   : > { %v334_v34 = vpop.f32.mrf.mxu3 }
 0x1bf   : > { %752 = vst.msk [vmem:[%s1176_s16 + $0xc8] sm:$0xff] %vm287_vm1, %v334_v34 }
 0x1c2   : > { %573 = vmatpush.bf16.xpose.msra.mxu3 %v1141_v9 }
 0x1c3   : > { %v532_v2 = vpop.f32.mrf.mxu1 }
 0x1c4   : > { %811 = vst.msk [vmem:[%s1176_s16 + $0x98] sm:$0xff] %vm287_vm1, %v532_v2 }
 0x1c6   : > { %v337_v35 = vpop.f32.mrf.mxu3 }
 0x1c7   : > { %753 = vst.msk [vmem:[%s1176_s16 + $0xd0] sm:$0xff] %vm287_vm1, %v337_v35 }
 0x1c9   : > { %787 = vmatmul.msk.bf16.gmra.mxu3 %vm227_vm0, %v1112_v3 }
 0x1cb   : > { %v535_v4 = vpop.f32.mrf.mxu1 }
 0x1cc   : > { %812 = vst.msk [vmem:[%s1176_s16 + $0xa0] sm:$0xff] %vm287_vm1, %v535_v4 }
 0x1ce   : > { %v339_v36 = vpop.f32.mrf.mxu3 }
 0x1cf   : > { %754 = vst.msk [vmem:[%s1176_s16 + $0xd8] sm:$0xff] %vm287_vm1, %v339_v36 }
 0x1d3   : > { %v537_v7 = vpop.f32.mrf.mxu1 }
 0x1d4   : > { %813 = vst.msk [vmem:[%s1176_s16 + $0xa8] sm:$0xff] %vm287_vm1, %v537_v7 }
 0x1d6   : > { %v342_v37 = vpop.f32.mrf.mxu3 }
 0x1d7   : > { %755 = vst.msk [vmem:[%s1176_s16 + $0xe0] sm:$0xff] %vm287_vm1, %v342_v37 }
 0x1d9   : > { %788 = vmatmul.msk.bf16.gmra.mxu3 %vm227_vm0, %v1100_v0 }
 0x1db   : > { %v540_v10 = vpop.f32.mrf.mxu1 }
 0x1dc   : > { %814 = vst.msk [vmem:[%s1176_s16 + $0xb0] sm:$0xff] %vm287_vm1, %v540_v10 }
 0x1de   : > { %v344_v39 = vpop.f32.mrf.mxu3 }
 0x1df   : > { %756 = vst.msk [vmem:[%s1176_s16 + $0xe8] sm:$0xff] %vm287_vm1, %v344_v39 }
 0x1e3   : > { %v542_v13 = vpop.f32.mrf.mxu1 }
 0x1e4   : > { %815 = vst.msk [vmem:[%s1176_s16 + $0xb8] sm:$0xff] %vm287_vm1, %v542_v13 }
 0x1e6   : > { %v347_v40 = vpop.f32.mrf.mxu3 }
 0x1e7   : > { %757 = vst.msk [vmem:[%s1176_s16 + $0xf0] sm:$0xff] %vm287_vm1, %v347_v40 }
 0x1e9   : > { %822 = vmatmul.msk.bf16.vlgmr.msra.gmra.mxu3 %vm227_vm0, %v562_v38 }
 0x1ee   : > { %v349_v41 = vpop.f32.mrf.mxu3 }
 0x1ef   : > { %758 = vst.msk [vmem:[%s1176_s16 + $0xf8] sm:$0xff] %vm287_vm1, %v349_v41 }
 0x22c   : > { %v461_v42 = vpop.f32.mrf.mxu3 }
 0x22d   : > { %789 = vst.msk [vmem:[%s1176_s16 + $0x100] sm:$0xff] %vm287_vm1, %v461_v42 }
 0x234   : > { %v463_v43 = vpop.f32.mrf.mxu3 }
 0x235   : > { %790 = vst.msk [vmem:[%s1176_s16 + $0x108] sm:$0xff] %vm287_vm1, %v463_v43 }
 0x23c   : > { %v466_v45 = vpop.f32.mrf.mxu3 }
 0x23d   : > { %791 = vst.msk [vmem:[%s1176_s16 + $0x110] sm:$0xff] %vm287_vm1, %v466_v45 }
 0x244   : > { %v468_v48 = vpop.f32.mrf.mxu3 }
 0x245   : > { %792 = vst.msk [vmem:[%s1176_s16 + $0x118] sm:$0xff] %vm287_vm1, %v468_v48 }
 0x24c   : > { %v471_v50 = vpop.f32.mrf.mxu3 }
 0x24d   : > { %793 = vst.msk [vmem:[%s1176_s16 + $0x120] sm:$0xff] %vm287_vm1, %v471_v50 }
 0x254   : > { %v473_v53 = vpop.f32.mrf.mxu3 }
 0x255   : > { %794 = vst.msk [vmem:[%s1176_s16 + $0x128] sm:$0xff] %vm287_vm1, %v473_v53 }
 0x25c   : > { %v476_v54 = vpop.f32.mrf.mxu3 }
 0x25d   : > { %795 = vst.msk [vmem:[%s1176_s16 + $0x130] sm:$0xff] %vm287_vm1, %v476_v54 }
 0x264   : > { %v478_v55 = vpop.f32.mrf.mxu3 }
 0x265   : > { %796 = vst.msk [vmem:[%s1176_s16 + $0x138] sm:$0xff] %vm287_vm1, %v478_v55 }
 0x26c   : > { %v575_v56 = vpop.f32.mrf.mxu3 }
 0x274   : > { %v577_v57 = vpop.f32.mrf.mxu3 }
 0x275   : > { %v580_v58 = vpack.c.bf16 %v577_v57, %v575_v56 }
 0x277   : > { %588 = vmatpush.bf16.msra.mxu0 %v580_v58 }
 0x27a   : > { %823 = vmatmul.msk.bf16.vlgmr.msra.gmra.mxu0 %vm227_vm0, %v1137_v8 }
 0x28a   : > { %824 = vmatmul.msk.bf16.gmra.mxu0 %vm227_vm0, %v1125_v6 }
 0x29a   : > { %825 = vmatmul.msk.bf16.gmra.mxu0 %vm227_vm0, %v1112_v3 }
 0x2aa   : > { %826 = vmatmul.msk.bf16.gmra.mxu0 %vm227_vm0, %v1100_v0  ;;  %v403_v0 = vpop.f32.mrf.mxu2 }
 0x2ab   : > { %773 = vst.msk [vmem:[%s1176_s16 + $0x58] sm:$0xff] %vm287_vm1, %v403_v0 }
 0x2b2   : > { %v406_v3 = vpop.f32.mrf.mxu2 }
 0x2b3   : > { %774 = vst.msk [vmem:[%s1176_s16 + $0x60] sm:$0xff] %vm287_vm1, %v406_v3 }
 0x2ba   : > { %v408_v6 = vpop.f32.mrf.mxu2 }
 0x2bb   : > { %775 = vst.msk [vmem:[%s1176_s16 + $0x68] sm:$0xff] %vm287_vm1, %v408_v6 }
 0x2c2   : > { %v411_v9 = vpop.f32.mrf.mxu2 }
 0x2c3   : > { %776 = vst.msk [vmem:[%s1176_s16 + $0x70] sm:$0xff] %vm287_vm1, %v411_v9 }
 0x2ca   : > { %v413_v12 = vpop.f32.mrf.mxu2 }
 0x2cb   : > { %777 = vst.msk [vmem:[%s1176_s16 + $0x78] sm:$0xff] %vm287_vm1, %v413_v12 }
 0x2f7   : > { %v590_v5 = vpop.f32.mrf.mxu0 }
 0x2f8   : > { %827 = vst.msk [vmem:[%s1176_s16 + $0x140] sm:$0xff] %vm287_vm1, %v590_v5 }
 0x2ff   : > { %v592_v8 = vpop.f32.mrf.mxu0 }
 0x300   : > { %828 = vst.msk [vmem:[%s1176_s16 + $0x148] sm:$0xff] %vm287_vm1, %v592_v8 }
 0x307   : > { %v595_v11 = vpop.f32.mrf.mxu0 }
 0x308   : > { %829 = vst.msk [vmem:[%s1176_s16 + $0x150] sm:$0xff] %vm287_vm1, %v595_v11 }
 0x30f   : > { %v597_v14 = vpop.f32.mrf.mxu0 }
 0x310   : > { %830 = vst.msk [vmem:[%s1176_s16 + $0x158] sm:$0xff] %vm287_vm1, %v597_v14 }
 0x317   : > { %v600_v15 = vpop.f32.mrf.mxu0 }
 0x318   : > { %831 = vst.msk [vmem:[%s1176_s16 + $0x160] sm:$0xff] %vm287_vm1, %v600_v15 }
 0x31f   : > { %v602_v16 = vpop.f32.mrf.mxu0 }
 0x320   : > { %832 = vst.msk [vmem:[%s1176_s16 + $0x168] sm:$0xff] %vm287_vm1, %v602_v16 }
 0x327   : > { %v605_v17 = vpop.f32.mrf.mxu0 }
 0x328   : > { %833 = vst.msk [vmem:[%s1176_s16 + $0x170] sm:$0xff] %vm287_vm1, %v605_v17 }
 0x32f   : > { %v607_v18 = vpop.f32.mrf.mxu0 }
 0x330   : > { %834 = vst.msk [vmem:[%s1176_s16 + $0x178] sm:$0xff] %vm287_vm1, %v607_v18 }
 0x331   : > { %939 = shalt.err (!%p936_p7)
}
 0x332   : > { %s987_s27 = smov 128   ;;  %s988_s6 = smov 8  }
 0x333   : > { %864 = dma.vmem_to_hbm [thread:$0]  (%p1052_p9), %s634_s28, 6144, %s636_s30, %s620_s3, %s987_s27, %s987_s27, %s988_s6  }
 0x334 PF: > { %s650_s7 = sand.u32 1, %s966_s9   ;;  %p867_p8 = pnand %p711_p11, %p1056_p10 }
 0x335   : > { %s651_s8 = scalar_lea.sflag [#allocation4], %s650_s7 }
 0x336   : > { %p868_p12 = pneg %p867_p8 }
 0x338   : > { %961 = dma.done.wait (%p868_p12), %s651_s8, 6144  }
 0x339   : > { %963 = vsyncadd (%p868_p12), %s651_s8, 4294961152  ;;  %p15_p13 = scmp.ge.s32.totalorder %s1029_s15, 4   ;;  %s1360_s9 = smov %s970_s10 }
 0x33a   : > { %s1361_s10 = smov %s974_s11  ;;  %s1362_s11 = smov %s1041_s18 }
 0x33b   : > { %s1363_s12 = smov %s1029_s15  ;;  %17 = sbr.rel (!%p15_p13) target bundleno = 5 (0x5), region = 85 }
 0x340   :  { %657 = vsyncpa [#allocation3], 1 }
 0x341   :  { %659 = vsyncpa [#allocation3 + $0x1], 1 }
 0x342   :  { %660 = vsyncpa [#allocation4], 1 }
 0x343   :  { %662 = vsyncpa [#allocation4 + $0x1], 1 }

</bundles_post_ra>
